<compile_context>
chip_gen: v5e
topology: v5e:2x2
jax: 0.10.0
libtpu: 0.0.40
codegen_flags: <defaults>
</compile_context>

<pallas_src>
import jax
import jax.numpy as jnp
from jax.experimental import pallas as pl
from jax.experimental.pallas import tpu as pltpu

D_IN, H1, H2, H3, D_OUT = 256, 128, 64, 32, 1
TILE_B = 8  # sublane-aligned batch tile


# ------------------------------ kernel --------------------------------------
def _mlp_kernel(x_ref, w1_ref, w2_ref, w3_ref, w4_ref, b_ref, o_ref):
    """Fused fc1->relu->fc2->relu->fc3->relu->fc4 (dropout = identity)."""
    b = b_ref[...]                                    # [4, 128] packed f32 biases
    x = x_ref[...].astype(jnp.bfloat16)               # [TB, 256]

    h = jnp.dot(x, w1_ref[...], preferred_element_type=jnp.float32) + b[0:1, :H1]
    h = jnp.maximum(h, 0.0)                           # relu1 (+drp1 = id)

    h = jnp.dot(h.astype(jnp.bfloat16), w2_ref[...],
                preferred_element_type=jnp.float32) + b[1:2, :H2]
    h = jnp.maximum(h, 0.0)                           # relu2 (+drp2 = id)

    h = jnp.dot(h.astype(jnp.bfloat16), w3_ref[...],
                preferred_element_type=jnp.float32) + b[2:3, :H3]
    h = jnp.maximum(h, 0.0)                           # relu3 (+drp3 = id)

    # fc4: [TB,32] x [32,1] -> VPU multiply + lane reduction (skip N=1 MXU pass).
    w4 = w4_ref[...].astype(jnp.float32)              # [1, 32]
    out = jnp.sum(h * w4, axis=-1, keepdims=True) + b[3:4, 0:1]
    o_ref[...] = out.astype(o_ref.dtype)              # [TB, 1]


# ------------------------------ wrapper --------------------------------------
def mlp_forward(x, params):
    w1, w2, w3, w4_row, b_pack = params
    B = x.shape[0]
    assert B % TILE_B == 0, (B, TILE_B)

    resident = lambda i: (0, 0)  # same block every step -> weights stay in VMEM
    return pl.pallas_call(
        _mlp_kernel,
        out_shape=jax.ShapeDtypeStruct((B, D_OUT), jnp.float32),
        grid_spec=pltpu.PrefetchScalarGridSpec(
            num_scalar_prefetch=0,
            grid=(B // TILE_B,),
            in_specs=[
                pl.BlockSpec((TILE_B, D_IN), lambda i: (i, 0)),  # activations
                pl.BlockSpec((D_IN, H1), resident),              # w1 (bf16)
                pl.BlockSpec((H1, H2), resident),                # w2 (bf16)
                pl.BlockSpec((H2, H3), resident),                # w3 (bf16)
                pl.BlockSpec((1, H3), resident),                 # w4 row (bf16)
                pl.BlockSpec((4, 128), resident),                # packed biases (f32)
            ],
            out_specs=pl.BlockSpec((TILE_B, D_OUT), lambda i: (i, 0)),
        ),
        compiler_params=pltpu.CompilerParams(
            dimension_semantics=("parallel",)),
    )(x, w1, w2, w3, w4_row, b_pack)


# --------------------------- parameter init ----------------------------------
def make_params(key):
    """PyTorch-style uniform(-1/sqrt(fan_in), 1/sqrt(fan_in)) init."""
    def linear(k, fan_in, fan_out):
        kw, kb = jax.random.split(k)
        bound = 1.0 / jnp.sqrt(jnp.float32(fan_in))
        w = jax.random.uniform(kw, (fan_in, fan_out), jnp.float32, -bound, bound)
        b = jax.random.uniform(kb, (fan_out,), jnp.float32, -bound, bound)
        return w, b

    k1, k2, k3, k4 = jax.random.split(key, 4)
    w1, b1 = linear(k1, D_IN, H1)
    w2, b2 = linear(k2, H1, H2)
    w3, b3 = linear(k3, H2, H3)
    w4, b4 = linear(k4, H3, D_OUT)

    # frozen weights in bf16 (halves weight HBM->VMEM bytes); f32 accumulation in-kernel
    w1 = w1.astype(jnp.bfloat16)
    w2 = w2.astype(jnp.bfloat16)
    w3 = w3.astype(jnp.bfloat16)
    w4_row = w4.T.astype(jnp.bfloat16)                # [1, 32] for the VPU tail
    # TODO(synk): optional fp8 quantization of w1 on v7x was not applied (accuracy budget).

    # pack all biases into a single lane-padded [4, 128] f32 operand
    def pad128(b):
        return jnp.pad(b, (0, 128 - b.shape[0]))
    b_pack = jnp.stack([pad128(b1), pad128(b2), pad128(b3), pad128(b4)])
    return w1, w2, w3, w4_row, b_pack


# --------------------------- pure-JAX reference -------------------------------
def mlp_reference(x, params):
    w1, w2, w3, w4_row, b_pack = params
    h = jnp.maximum(jnp.dot(x.astype(jnp.bfloat16), w1,
                            preferred_element_type=jnp.float32) + b_pack[0, :H1], 0.0)
    h = jnp.maximum(jnp.dot(h.astype(jnp.bfloat16), w2,
                            preferred_element_type=jnp.float32) + b_pack[1, :H2], 0.0)
    h = jnp.maximum(jnp.dot(h.astype(jnp.bfloat16), w3,
                            preferred_element_type=jnp.float32) + b_pack[2, :H3], 0.0)
    return jnp.sum(h * w4_row.astype(jnp.float32), axis=-1, keepdims=True) + b_pack[3, 0]


# --------------------------------- main ---------------------------------------
if __name__ == "__main__":
    key = jax.random.PRNGKey(0)
    kx, kp = jax.random.split(key)

    B = 16  # 2 batch tiles -> exercises the parallel grid with resident weights
    x = jax.random.normal(kx, (B, D_IN), jnp.float32)
    params = make_params(kp)

    out = jax.jit(mlp_forward)(x, params)
    out = jax.block_until_ready(out)
    assert out.shape == (B, D_OUT), out.shape

    ref = mlp_reference(x, params)
    max_err = float(jnp.max(jnp.abs(out - ref)))
    assert jnp.allclose(out, ref, rtol=2e-2, atol=2e-2), max_err
    print("KERNEL_OK")
</pallas_src>

<mosaic_0001>
module attributes {stable_mosaic.version = 11 : i64} {
  func.func @_mlp_kernel(%arg0: i32, %arg1: memref<8x256xf32, #tpu.memory_space<vmem>>, %arg2: memref<256x128xbf16, #tpu.memory_space<vmem>>, %arg3: memref<128x64xbf16, #tpu.memory_space<vmem>>, %arg4: memref<64x32xbf16, #tpu.memory_space<vmem>>, %arg5: memref<1x32xbf16, #tpu.memory_space<vmem>>, %arg6: memref<4x128xf32, #tpu.memory_space<vmem>>, %arg7: memref<8x1xf32, #tpu.memory_space<vmem>>) attributes {dimension_semantics = [#tpu.dimension_semantics<parallel>], iteration_bounds = array<i64: 2>, scalar_prefetch = 0 : i64, scratch_operands = 0 : i64, tpu.core_type = #tpu.core_type<tc>, window_params = [{transform_indices = @transform_0, window_bounds = array<i64: 8, 256>}, {pipeline_mode = #tpu.pipeline_mode<synchronous>, transform_indices = @transform_1, window_bounds = array<i64: 256, 128>}, {pipeline_mode = #tpu.pipeline_mode<synchronous>, transform_indices = @transform_2, window_bounds = array<i64: 128, 64>}, {pipeline_mode = #tpu.pipeline_mode<synchronous>, transform_indices = @transform_3, window_bounds = array<i64: 64, 32>}, {pipeline_mode = #tpu.pipeline_mode<synchronous>, transform_indices = @transform_4, window_bounds = array<i64: 1, 32>}, {pipeline_mode = #tpu.pipeline_mode<synchronous>, transform_indices = @transform_5, window_bounds = array<i64: 4, 128>}, {transform_indices = @transform_6, window_bounds = array<i64: 8, 1>}]} {
    %c0 = arith.constant 0 : index
    %c0_0 = arith.constant 0 : index
    %0 = vector.load %arg6[%c0, %c0_0] : memref<4x128xf32, #tpu.memory_space<vmem>>, vector<4x128xf32>
    %c0_1 = arith.constant 0 : index
    %c0_2 = arith.constant 0 : index
    %1 = vector.load %arg1[%c0_1, %c0_2] : memref<8x256xf32, #tpu.memory_space<vmem>>, vector<8x256xf32>
    %2 = arith.truncf %1 : vector<8x256xf32> to vector<8x256xbf16>
    %c0_3 = arith.constant 0 : index
    %c0_4 = arith.constant 0 : index
    %3 = vector.load %arg2[%c0_3, %c0_4] : memref<256x128xbf16, #tpu.memory_space<vmem>>, vector<256x128xbf16>
    %cst = arith.constant dense<0.000000e+00> : vector<8x128xf32>
    %4 = tpu.matmul %2, %3, %cst {dimension_numbers = #tpu.dot_dimension_numbers<[1], [0], [0], [1], [0, 0, 1, 1], [], []>} : vector<8x256xbf16>, vector<256x128xbf16>, vector<8x128xf32> -> vector<8x128xf32>
    %5 = vector.extract_strided_slice %0 {offsets = [0, 0], sizes = [1, 128], strides = [1, 1]} : vector<4x128xf32> to vector<1x128xf32>
    %6 = vector.broadcast %5 : vector<1x128xf32> to vector<8x128xf32>
    %7 = arith.addf %4, %6 : vector<8x128xf32>
    %cst_5 = arith.constant 0.000000e+00 : f32
    %8 = vector.broadcast %cst_5 : f32 to vector<8x128xf32>
    %9 = arith.maximumf %7, %8 : vector<8x128xf32>
    %10 = arith.truncf %9 : vector<8x128xf32> to vector<8x128xbf16>
    %c0_6 = arith.constant 0 : index
    %c0_7 = arith.constant 0 : index
    %11 = vector.load %arg3[%c0_6, %c0_7] : memref<128x64xbf16, #tpu.memory_space<vmem>>, vector<128x64xbf16>
    %cst_8 = arith.constant dense<0.000000e+00> : vector<8x64xf32>
    %12 = tpu.matmul %10, %11, %cst_8 {dimension_numbers = #tpu.dot_dimension_numbers<[1], [0], [0], [1], [0, 0, 1, 1], [], []>} : vector<8x128xbf16>, vector<128x64xbf16>, vector<8x64xf32> -> vector<8x64xf32>
    %13 = vector.extract_strided_slice %0 {offsets = [1, 0], sizes = [1, 64], strides = [1, 1]} : vector<4x128xf32> to vector<1x64xf32>
    %14 = vector.broadcast %13 : vector<1x64xf32> to vector<8x64xf32>
    %15 = arith.addf %12, %14 : vector<8x64xf32>
    %cst_9 = arith.constant 0.000000e+00 : f32
    %16 = vector.broadcast %cst_9 : f32 to vector<8x64xf32>
    %17 = arith.maximumf %15, %16 : vector<8x64xf32>
    %18 = arith.truncf %17 : vector<8x64xf32> to vector<8x64xbf16>
    %c0_10 = arith.constant 0 : index
    %c0_11 = arith.constant 0 : index
    %19 = vector.load %arg4[%c0_10, %c0_11] : memref<64x32xbf16, #tpu.memory_space<vmem>>, vector<64x32xbf16>
    %cst_12 = arith.constant dense<0.000000e+00> : vector<8x32xf32>
    %20 = tpu.matmul %18, %19, %cst_12 {dimension_numbers = #tpu.dot_dimension_numbers<[1], [0], [0], [1], [0, 0, 1, 1], [], []>} : vector<8x64xbf16>, vector<64x32xbf16>, vector<8x32xf32> -> vector<8x32xf32>
    %21 = vector.extract_strided_slice %0 {offsets = [2, 0], sizes = [1, 32], strides = [1, 1]} : vector<4x128xf32> to vector<1x32xf32>
    %22 = vector.broadcast %21 : vector<1x32xf32> to vector<8x32xf32>
    %23 = arith.addf %20, %22 : vector<8x32xf32>
    %cst_13 = arith.constant 0.000000e+00 : f32
    %24 = vector.broadcast %cst_13 : f32 to vector<8x32xf32>
    %25 = arith.maximumf %23, %24 : vector<8x32xf32>
    %c0_14 = arith.constant 0 : index
    %c0_15 = arith.constant 0 : index
    %26 = vector.load %arg5[%c0_14, %c0_15] : memref<1x32xbf16, #tpu.memory_space<vmem>>, vector<1x32xbf16>
    %27 = arith.extf %26 : vector<1x32xbf16> to vector<1x32xf32>
    %28 = vector.broadcast %27 : vector<1x32xf32> to vector<8x32xf32>
    %29 = arith.mulf %25, %28 : vector<8x32xf32>
    %cst_16 = arith.constant dense<0.000000e+00> : vector<8xf32>
    %30 = vector.multi_reduction <add>, %29, %cst_16 [1] : vector<8x32xf32> to vector<8xf32>
    %31 = vector.shape_cast %30 : vector<8xf32> to vector<8x1xf32>
    %32 = vector.extract_strided_slice %0 {offsets = [3, 0], sizes = [1, 1], strides = [1, 1]} : vector<4x128xf32> to vector<1x1xf32>
    %33 = vector.broadcast %32 : vector<1x1xf32> to vector<8x1xf32>
    %34 = arith.addf %31, %33 : vector<8x1xf32>
    %c0_17 = arith.constant 0 : index
    %c0_18 = arith.constant 0 : index
    %35 = vector.load %arg7[%c0_17, %c0_18] : memref<8x1xf32, #tpu.memory_space<vmem>>, vector<8x1xf32>
    tpu.vector_store %arg7[%c0_17, %c0_18], %34 {strides = array<i32>} : memref<8x1xf32, #tpu.memory_space<vmem>>, vector<8x1xf32>,
    return
  }
  func.func @transform_0(%arg0: i32) -> (i32, i32) {
    %c0_i32 = arith.constant 0 : i32
    %c0_i32_0 = arith.constant 0 : i32
    return %arg0, %c0_i32 : i32, i32
  }
  func.func @transform_1(%arg0: i32) -> (i32, i32) {
    %c0_i32 = arith.constant 0 : i32
    %c0_i32_0 = arith.constant 0 : i32
    %c0_i32_1 = arith.constant 0 : i32
    return %c0_i32, %c0_i32_0 : i32, i32
  }
  func.func @transform_2(%arg0: i32) -> (i32, i32) {
    %c0_i32 = arith.constant 0 : i32
    %c0_i32_0 = arith.constant 0 : i32
    %c0_i32_1 = arith.constant 0 : i32
    return %c0_i32, %c0_i32_0 : i32, i32
  }
  func.func @transform_3(%arg0: i32) -> (i32, i32) {
    %c0_i32 = arith.constant 0 : i32
    %c0_i32_0 = arith.constant 0 : i32
    %c0_i32_1 = arith.constant 0 : i32
    return %c0_i32, %c0_i32_0 : i32, i32
  }
  func.func @transform_4(%arg0: i32) -> (i32, i32) {
    %c0_i32 = arith.constant 0 : i32
    %c0_i32_0 = arith.constant 0 : i32
    %c0_i32_1 = arith.constant 0 : i32
    return %c0_i32, %c0_i32_0 : i32, i32
  }
  func.func @transform_5(%arg0: i32) -> (i32, i32) {
    %c0_i32 = arith.constant 0 : i32
    %c0_i32_0 = arith.constant 0 : i32
    %c0_i32_1 = arith.constant 0 : i32
    return %c0_i32, %c0_i32_0 : i32, i32
  }
  func.func @transform_6(%arg0: i32) -> (i32, i32) {
    %c0_i32 = arith.constant 0 : i32
    %c0_i32_0 = arith.constant 0 : i32
    return %arg0, %c0_i32 : i32, i32
  }
}

</mosaic_0001>

<bundles_post_ra>
// kernel: mlp_forward.1
= control target key start
LH: loop header
LB: loop body
LE: loop exit
PB: predicated region body
PF: predicated region fallthrough
CT: control target
= control target key end

     0   :  { %11 = vsyncpa [#allocation3], 0  ;;  %s893_s21 = smov 0   ;;  %s964_s0 = inlined_call_operand.vmem [shape: f32[16,256], index: 0, kind: input, shape index: {}]   ;;  %s965_s1 = inlined_call_operand.hbm [shape: bf16[256,128], index: 1, kind: input, shape index: {}]   ;;  %s966_s2 = inlined_call_operand.vmem [shape: bf16[128,64], index: 2, kind: input, shape index: {}]   ;;  %s967_s3 = inlined_call_operand.vmem [shape: bf16[64,32], index: 3, kind: input, shape index: {}]   ;;  %s968_s4 = inlined_call_operand.vmem [shape: bf16[1,32], index: 4, kind: input, shape index: {}]   ;;  %s969_s5 = inlined_call_operand.vmem [shape: f32[4,128], index: 5, kind: input, shape index: {}]   ;;  %s970_s6 = inlined_call_operand.vmem [shape: f32[16,1], index: 6, kind: output, shape index: {}]  }
   0x1 LB: > { %s190_s24 = sshll.u32 %s965_s1, 4  ;;  %s902_s25 = sadd.s32 4294967295, %s853_s21   ;;  %s853_s21 = sphi %s893_s21, %s17_s21   ;;  %s191_s24 = int_to_ptr.hbm [resolvable:$true] %s190_s24 }
   0x2   : > { %p640_p0 = scmp.ge.s32.totalorder %s853_s21, 1  ;;  %p179_p1 = scmp.lt.s32.totalorder %s853_s21, 3 }
   0x3   : > { %p800_p2 = scmp.eq.s32.totalorder %s902_s25, 0  ;;  %s855_s26 = smov [#allocation2]  }
   0x4   : > { %p180_p3 = pnand %p640_p0, %p179_p1  ;;  %s192_s27 = sshll.u32 %s855_s26, 4  ;;  %s193_s27 = int_to_ptr.vmem [resolvable:$true] %s192_s27 }
   0x5   : > { %s856_s28 = smov 64   ;;  %s857_s29 = smov 4  }
   0x6   : > { %p796_p4 = pneg %p180_p3  ;;  %228 = sbr.rel (%p180_p3) target bundleno = 574 (0x23e), region = 44 }
   0x8   : > { %p797_p5 = pnand %p800_p2, %p796_p4 }
   0xa   : > { %799 = dma.hbm_to_vmem [thread:$0]  (!%p797_p5), %s191_s24, 2048, %s193_s27, [#allocation3], %s856_s28, %s856_s28, %s857_s29  }
   0xb   : > { %848 = dma.done.wait (%p800_p2), [#allocation3], 2048  }
   0xc   : > { %850 = vsyncadd (%p800_p2), [#allocation3], 4294965248  ;;  %v771_v0 = vld [vmem:[#allocation2 + $0x38] sm:$0xff]  ;;  %v770_v2 = vld [vmem:[#allocation2 + $0x30] sm:$0xff]  ;;  %p258_p6 = scmp.lt.s32.totalorder %s902_s25, 1  ;;  %vm543_vm0 = vcmask 523264  }
   0xd   : > { %v779_v1 = vld [vmem:[#allocation2 + $0x78] sm:$0xff]  ;;  %402 = vmatpush.bf16.msra.mxu0 %v771_v0  ;;  %v778_v3 = vld [vmem:[#allocation2 + $0x70] sm:$0xff]  ;;  %v769_v4 = vld [vmem:[#allocation2 + $0x28] sm:$0xff]  ;;  %vm565_vm1 = vcmask 261120   ;;  %vm571_vm2 = vcmask 7168  }
   0xe   : > { %415 = vmatpush.bf16.msra.mxu1 %v779_v1  ;;  %v777_v5 = vld [vmem:[#allocation2 + $0x68] sm:$0xff]  ;;  %v787_v6 = vld [vmem:[%s966_s2 + $0x38] sm:$0xff]  ;;  %v786_v7 = vld [vmem:[%s966_s2 + $0x30] sm:$0xff]  ;;  %s972_s25 = smov (!%p258_p6, %s902_s25), 1 }
   0xf   : > { %495 = vmatpush.bf16.msra.mxu2 %v787_v6  ;;  %v768_v8 = vld [vmem:[#allocation2 + $0x20] sm:$0xff]  ;;  %v785_v10 = vld [vmem:[%s966_s2 + $0x28] sm:$0xff]  ;;  %v767_v11 = vld [vmem:[#allocation2 + $0x18] sm:$0xff]  ;;  %s763_s14 = sshll.u32 %s972_s25, 4  ;;  %s647_s16 = sshll.u32 %s972_s25, 3 }
  0x10   : > { %v776_v9 = vld [vmem:[#allocation2 + $0x60] sm:$0xff]  ;;  %v775_v12 = vld [vmem:[#allocation2 + $0x58] sm:$0xff]  ;;  %v766_v14 = vld [vmem:[#allocation2 + $0x10] sm:$0xff]  ;;  %s262_s19 = scalar_lea.vmem %s964_s0, %s763_s14 }
  0x11   : > { %403 = vmatpush.bf16.msra.mxu0 %v770_v2  ;;  %v784_v13 = vld [vmem:[%s966_s2 + $0x20] sm:$0xff]  ;;  %v774_v15 = vld [vmem:[#allocation2 + $0x50] sm:$0xff]  ;;  %v783_v16 = vld [vmem:[%s966_s2 + $0x18] sm:$0xff] }
  0x12   : > { %416 = vmatpush.bf16.msra.mxu1 %v778_v3  ;;  %v765_v17 = vld [vmem:[#allocation2 + $0x8] sm:$0xff]  ;;  %v782_v19 = vld [vmem:[%s966_s2 + $0x10] sm:$0xff]  ;;  %v764_v20 = vld [vmem:[#allocation2] sm:$0xff] }
  0x13   : > { %496 = vmatpush.bf16.msra.mxu2 %v786_v7  ;;  %v773_v18 = vld [vmem:[#allocation2 + $0x48] sm:$0xff]  ;;  %v772_v21 = vld [vmem:[#allocation2 + $0x40] sm:$0xff]  ;;  %v791_v28 = vld [vmem:[%s967_s3 + $0x18] sm:$0xff] }
  0x14   : > { %v269_v22 = vld [vmem:[%s262_s19] sm:$0xff]  ;;  %v270_v23 = vld [vmem:[%s262_s19 + $0x8] sm:$0xff]  ;;  %551 = vmatpush.bf16.msra.mxu3 %v791_v28  ;;  %v790_v29 = vld [vmem:[%s967_s3 + $0x10] sm:$0xff]  ;;  %s266_s19 = scalar_lea.vmem %s970_s6, %s647_s16 }
  0x15   : > { %404 = vmatpush.bf16.msra.mxu0 %v769_v4  ;;  %v271_v24 = vpack.c.bf16 %v269_v22, %v269_v22  ;;  %v272_v25 = vpack.c.bf16 %v270_v23, %v270_v23  ;;  %v781_v26 = vld [vmem:[%s966_s2 + $0x8] sm:$0xff]  ;;  %v780_v27 = vld [vmem:[%s966_s2] sm:$0xff] }
  0x16   : > { %417 = vmatpush.bf16.msra.mxu1 %v777_v5  ;;  %v268_v30 = vld [vmem:[%s969_s5] sm:$0xf]  ;;  %v789_v40 = vld [vmem:[%s967_s3 + $0x8] sm:$0xff] }
  0x17   : > { %497 = vmatpush.bf16.msra.mxu2 %v785_v10  ;;  %v305_v31 = vperm.slane %v268_v30, 0  ;;  %v788_v41 = vld [vmem:[%s967_s3] sm:$0xff]  ;;  %v446_v42 = vperm.slane %v268_v30, 1  ;;  %v518_v49 = vperm.slane %v268_v30, 2  ;;  %v569_v58 = vperm.slane %v268_v30, 3 }
  0x18   : > { %552 = vmatpush.bf16.msra.mxu3 %v790_v29  ;;  %v561_v48 = vld [vmem:[%s968_s4] sm:$0x1] }
  0x19   : > { %405 = vmatpush.bf16.msra.mxu0 %v768_v8  ;;  %v562_v50 = vunpack.c.l.bf16 %v561_v48 }
  0x1a   : > { %418 = vmatpush.bf16.msra.mxu1 %v776_v9 }
  0x1b   : > { %498 = vmatpush.bf16.msra.mxu2 %v784_v13  ;;  %v563_v53 = vperm.slane %v562_v50, 0 }
  0x1c   : > { %553 = vmatpush.bf16.msra.mxu3 %v789_v40 }
  0x1d   : > { %406 = vmatpush.bf16.msra.mxu0 %v767_v11 }
  0x1e   : > { %419 = vmatpush.bf16.msra.mxu1 %v775_v12 }
  0x1f   : > { %499 = vmatpush.bf16.msra.mxu2 %v783_v16 }
  0x20   : > { %554 = vmatpush.bf16.msra.mxu3 %v788_v41 }
  0x21   : > { %407 = vmatpush.bf16.msra.mxu0 %v766_v14 }
  0x22   : > { %420 = vmatpush.bf16.msra.mxu1 %v774_v15 }
  0x23   : > { %500 = vmatpush.bf16.msra.mxu2 %v782_v19 }
  0x25   : > { %408 = vmatpush.bf16.msra.mxu0 %v765_v17 }
  0x26   : > { %421 = vmatpush.bf16.msra.mxu1 %v773_v18 }
  0x27   : > { %501 = vmatpush.bf16.msra.mxu2 %v781_v26 }
  0x29   : > { %409 = vmatpush.bf16.msra.mxu0 %v764_v20 }
  0x2a   : > { %422 = vmatpush.bf16.msra.mxu1 %v772_v21 }
  0x2b   : > { %502 = vmatpush.bf16.msra.mxu2 %v780_v27 }
  0x2c   : > { %410 = vmatmul.bf16.vlgmr.msra.gmra.mxu0 %v271_v24 }
  0x2d   : > { %423 = vmatmul.bf16.vlgmr.msra.gmra.mxu1 %v272_v25 }
  0xa9   : > { %v411_v32 = vpop.f32.mrf.mxu0 }
  0xaa   : > { %v424_v33 = vpop.f32.mrf.mxu1  ;;  %v412_v34 = vadd.f32 %v411_v32, %v305_v31 }
  0xac   : > { %v425_v35 = vadd.f32 %v424_v33, %v412_v34 }
  0xae   : > { %v428_v36 = vmax.f32 %v425_v35, 0.0 }
  0xb0   : > { %v429_v37 = vpack.c.bf16 %v428_v36, %v428_v36 }
  0xb1   : > { %v413_v38 = vpop.f32.mrf.mxu0 }
  0xb2   : > { %v426_v39 = vpop.f32.mrf.mxu1  ;;  %503 = vmatmul.bf16.vlgmr.msra.gmra.mxu2 %v429_v37 }
 0x135   : > { %v504_v43 = vpop.f32.mrf.mxu2 }
 0x136   : > { %v505_v44 = vadd.f32 %v504_v43, %v446_v42 }
 0x138   : > { %v508_v45 = vmax.f32 %v505_v44, 0.0 }
 0x13a   : > { %v509_v46 = vpack.c.bf16 %v508_v45, %v508_v45 }
 0x13c   : > { %760 = vmatmul.msk.bf16.vlgmr.msra.gmra.mxu3 %vm543_vm0, %v509_v46 }
 0x13d   : > { %v506_v47 = vpop.f32.mrf.mxu2 }
 0x1bf   : > { %v556_v51 = vpop.f32.mrf.mxu3 }
 0x1c0   : > { %v557_v52 = vadd.f32 %v556_v51, %v518_v49 }
 0x1c2   : > { %v560_v54 = vmax.f32 %v557_v52, 0.0 }
 0x1c4   : > { %v564_v55 = vmul.f32 %v563_v53, %v560_v54 }
 0x1c6   : > { %v566_v56 = vsel %vm565_vm1, %v564_v55, 0.0 }
 0x1c7   : > { %v558_v57 = vpop.f32.mrf.mxu3  ;;  %567 = vadd.xlane.f32.xlu0 %v566_v56 }
 0x23a   : > { %v568_v59 = vpop.xlane.xlu0 %567 }
 0x23b   : > { %v570_v60 = vadd.f32 %v569_v58, %v568_v59 }
 0x23d   : > { %572 = vst.msk [vmem:[%s266_s19] sm:$0xff] %vm571_vm2, %v570_v60 }
 0x23e PF: > { %s17_s21 = sadd.s32 1, %s853_s21  }
 0x23f   : > { %p14_p7 = scmp.ge.s32.totalorder %s17_s21, 4  }
 0x241   :  { %16 = sbr.rel (!%p14_p7) target bundleno = 1 (0x1), region = 79 }
 0x246   :  { %592 = vsyncpa [#allocation3], 1 }
 0x247   :  { %594 = vsyncpa [#allocation3 + $0x1], 1 }

</bundles_post_ra>
